<compile_context>
chip_gen: v5e
topology: v5e:2x2
jax: 0.10.0
libtpu: 0.0.40
codegen_flags: <defaults>
</compile_context>

<pallas_src>
import jax
import jax.numpy as jnp
from jax.experimental import pallas as pl
from jax.experimental.pallas import tpu as pltpu


# ---------------------------------------------------------------------------
# Pallas kernel: per output-column tile of the GCN + Mish.
#   a_ref  : [N, TN]  bf16   A_hat^T column tile (contraction dim resident)
#   xt_ref : [F, N]   f32    x^T (small, resident across the grid)
#   wt_ref : [1, F]   f32    W^T
#   b_ref  : [1, 1]   f32    bias, in SMEM (scalar)
#   o_ref  : [1, TN]  f32    lane-dense output row tile
# ---------------------------------------------------------------------------
def gcn_mish_kernel(a_ref, xt_ref, wt_ref, b_ref, o_ref):
    # r = W^T @ X^T : [1, F] @ [F, N] -> [1, N]   (tiny, recomputed per tile)
    r = jnp.dot(wt_ref[...], xt_ref[...], preferred_element_type=jnp.float32)
    # aggregate over source nodes for this column tile:
    # [1, N] @ [N, TN] -> [1, TN]   (bf16 MXU, f32 accumulation)
    z = jnp.dot(r.astype(jnp.bfloat16), a_ref[...],
                preferred_element_type=jnp.float32)
    z = z + b_ref[0, 0]
    # Mish(z) = z * tanh(softplus(z)).  With u = 1 + e^z:
    #   tanh(log(u)) = (u^2 - 1) / (u^2 + 1)
    # -> one EUP exp + one approx reciprocal instead of logaddexp + tanh.
    # Clamp the exp argument; for z > 20 the factor is already ~1.
    u = 1.0 + jnp.exp(jnp.minimum(z, 20.0))
    u2 = u * u
    o_ref[...] = z * (u2 - 1.0) * pl.reciprocal(u2 + 1.0, approx=True)


def _pick_col_tile(n):
    # Lane-axis (output-column) tile: large enough to amortize per-step overhead,
    # small enough that two double-buffered bf16 (N, TN) tiles stay well under the
    # v7x 64 MiB VMEM budget (v5e/v6e have 128 MiB, so the same choice is safe).
    for tn in (2048, 1024, 512, 256, 128):
        if n % tn == 0 and 2 * n * tn * 2 <= 40 * 1024 * 1024:
            return tn
    return n


def gcn_mish_pallas(a_t, x_t, w_t, b):
    n = a_t.shape[0]
    f = x_t.shape[0]
    tn = _pick_col_tile(n)

    cost = pl.CostEstimate(
        flops=2 * n * n + 2 * n * f,
        transcendentals=2 * n,                       # exp + approx reciprocal
        bytes_accessed=(a_t.size * a_t.dtype.itemsize
                        + x_t.size * 4 + w_t.size * 4 + n * 4 + 4),
    )

    return pl.pallas_call(
        gcn_mish_kernel,
        out_shape=jax.ShapeDtypeStruct((1, n), jnp.float32),
        grid_spec=pl.GridSpec(
            grid=(n // tn,),
            in_specs=[
                pl.BlockSpec((n, tn), lambda i: (0, i)),   # A_hat^T column tile
                pl.BlockSpec((f, n), lambda i: (0, 0)),    # x^T (resident)
                pl.BlockSpec((1, f), lambda i: (0, 0)),    # W^T (resident)
                pl.BlockSpec(memory_space=pltpu.MemorySpace.SMEM),  # bias scalar
            ],
            out_specs=pl.BlockSpec((1, tn), lambda i: (0, i)),
        ),
        compiler_params=pltpu.CompilerParams(
            dimension_semantics=("parallel",),
            vmem_limit_bytes=48 * 1024 * 1024,
        ),
        cost_estimate=cost,
    )(a_t, x_t, w_t, b)


# ---------------------------------------------------------------------------
# Glue (plain JAX): dense GCN-normalized adjacency, TRANSPOSED, in bf16.
# Mirrors torch_geometric.nn.GCNConv's gcn_norm with add_self_loops=True.
# A_T[src, dst] = norm  so  out_row = (x@W)^T @ A_T  equals  A_hat @ (x@W).
# ---------------------------------------------------------------------------
def build_normalized_adjacency_t(edge_index, edge_weight, num_nodes,
                                 dtype=jnp.bfloat16):
    src = edge_index[0]
    dst = edge_index[1]
    loop = jnp.arange(num_nodes, dtype=edge_index.dtype)
    src = jnp.concatenate([src, loop])
    dst = jnp.concatenate([dst, loop])
    w = jnp.concatenate([edge_weight,
                         jnp.ones((num_nodes,), dtype=edge_weight.dtype)])
    # degree on the target (col) index, as in PyG gcn_norm
    deg = jnp.zeros((num_nodes,), dtype=jnp.float32).at[dst].add(w)
    deg_inv_sqrt = jnp.where(deg > 0, 1.0 / jnp.sqrt(deg), 0.0)
    norm = deg_inv_sqrt[src] * w * deg_inv_sqrt[dst]
    a_t = jnp.zeros((num_nodes, num_nodes), dtype=jnp.float32).at[src, dst].add(norm)
    return a_t.astype(dtype)


def graphnet_forward(x, edge_index, edge_attr, w, b):
    n = x.shape[0]
    # TODO(synk): fuse the sparse normalized-adjacency scatter into the kernel
    # (scalar-prefetch edge lists) to avoid the dense N^2 HBM write+re-read.
    a_t = build_normalized_adjacency_t(edge_index, edge_attr, n)
    x_t = jnp.transpose(x)   # [F, N]
    w_t = jnp.transpose(w)   # [1, F]
    return gcn_mish_pallas(a_t, x_t, w_t, b)   # [1, N] == x.view(1, -1)


# ---------------------------------------------------------------------------
# Pure-JAX f32 reference (exact Mish, f32 adjacency) for correctness check.
# ---------------------------------------------------------------------------
def graphnet_ref(x, edge_index, edge_attr, w, b):
    n = x.shape[0]
    src = edge_index[0]
    dst = edge_index[1]
    loop = jnp.arange(n, dtype=edge_index.dtype)
    src = jnp.concatenate([src, loop])
    dst = jnp.concatenate([dst, loop])
    ew = jnp.concatenate([edge_attr, jnp.ones((n,), dtype=jnp.float32)])
    deg = jnp.zeros((n,), dtype=jnp.float32).at[dst].add(ew)
    dis = jnp.where(deg > 0, 1.0 / jnp.sqrt(deg), 0.0)
    norm = dis[src] * ew * dis[dst]
    a_hat = jnp.zeros((n, n), dtype=jnp.float32).at[dst, src].add(norm)
    z = a_hat @ (x @ w) + b[0, 0]
    mish = z * jnp.tanh(jax.nn.softplus(z))
    return mish.reshape(1, -1)


if __name__ == "__main__":
    key = jax.random.PRNGKey(0)
    k_x, k_ei, k_ea, k_w, k_b = jax.random.split(key, 5)

    num_nodes = 16
    num_features = 8
    num_edges = 32

    # deterministic synthetic graph
    x = jax.random.normal(k_x, (num_nodes, num_features), dtype=jnp.float32)
    edge_index = jax.random.randint(k_ei, (2, num_edges), 0, num_nodes,
                                    dtype=jnp.int32)
    edge_attr = jax.random.uniform(k_ea, (num_edges,), dtype=jnp.float32) + 0.1

    # deterministic GCNConv(num_features, 1) parameters
    w = jax.random.normal(k_w, (num_features, 1), dtype=jnp.float32) * 0.5
    b = jax.random.normal(k_b, (1, 1), dtype=jnp.float32) * 0.1

    out = graphnet_forward(x, edge_index, edge_attr, w, b)
    out = jax.block_until_ready(out)

    ref = graphnet_ref(x, edge_index, edge_attr, w, b)
    assert out.shape == (1, num_nodes), out.shape
    # bf16 adjacency + approx reciprocal -> loose-but-meaningful tolerance
    assert jnp.allclose(out, ref, atol=5e-2, rtol=5e-2), (out, ref)

    print("KERNEL_OK")
</pallas_src>

<mosaic_0001>
module attributes {stable_mosaic.version = 11 : i64} {
  func.func @gcn_mish_kernel(%arg0: i32, %arg1: memref<16x16xbf16, #tpu.memory_space<vmem>>, %arg2: memref<8x16xf32, #tpu.memory_space<vmem>>, %arg3: memref<1x8xf32, #tpu.memory_space<vmem>>, %arg4: memref<1x1xf32, #tpu.memory_space<smem>>, %arg5: memref<1x16xf32, #tpu.memory_space<vmem>>) attributes {dimension_semantics = [#tpu.dimension_semantics<parallel>], iteration_bounds = array<i64: 1>, scalar_prefetch = 0 : i64, scratch_operands = 0 : i64, tpu.core_type = #tpu.core_type<tc>, window_params = [{transform_indices = @transform_0, window_bounds = array<i64: 16, 16>}, {pipeline_mode = #tpu.pipeline_mode<synchronous>, transform_indices = @transform_1, window_bounds = array<i64: 8, 16>}, {pipeline_mode = #tpu.pipeline_mode<synchronous>, transform_indices = @transform_2, window_bounds = array<i64: 1, 8>}, {transform_indices = @transform_3, window_bounds = array<i64: 1, 1>}, {transform_indices = @transform_4, window_bounds = array<i64: 1, 16>}]} {
    %c0 = arith.constant 0 : index
    %c0_0 = arith.constant 0 : index
    %0 = vector.load %arg3[%c0, %c0_0] : memref<1x8xf32, #tpu.memory_space<vmem>>, vector<1x8xf32>
    %c0_1 = arith.constant 0 : index
    %c0_2 = arith.constant 0 : index
    %1 = vector.load %arg2[%c0_1, %c0_2] : memref<8x16xf32, #tpu.memory_space<vmem>>, vector<8x16xf32>
    %cst = arith.constant dense<0.000000e+00> : vector<1x16xf32>
    %2 = tpu.matmul %0, %1, %cst {dimension_numbers = #tpu.dot_dimension_numbers<[1], [0], [0], [1], [0, 0, 1, 1], [], []>} : vector<1x8xf32>, vector<8x16xf32>, vector<1x16xf32> -> vector<1x16xf32>
    %3 = arith.truncf %2 : vector<1x16xf32> to vector<1x16xbf16>
    %c0_3 = arith.constant 0 : index
    %c0_4 = arith.constant 0 : index
    %4 = vector.load %arg1[%c0_3, %c0_4] : memref<16x16xbf16, #tpu.memory_space<vmem>>, vector<16x16xbf16>
    %cst_5 = arith.constant dense<0.000000e+00> : vector<1x16xf32>
    %5 = tpu.matmul %3, %4, %cst_5 {dimension_numbers = #tpu.dot_dimension_numbers<[1], [0], [0], [1], [0, 0, 1, 1], [], []>} : vector<1x16xbf16>, vector<16x16xbf16>, vector<1x16xf32> -> vector<1x16xf32>
    %c0_6 = arith.constant 0 : index
    %c0_7 = arith.constant 0 : index
    %6 = memref.load %arg4[%c0_6, %c0_7] : memref<1x1xf32, #tpu.memory_space<smem>>
    %7 = vector.broadcast %6 : f32 to vector<1x16xf32>
    %8 = arith.addf %5, %7 : vector<1x16xf32>
    %cst_8 = arith.constant 2.000000e+01 : f32
    %9 = vector.broadcast %cst_8 : f32 to vector<1x16xf32>
    %10 = arith.minimumf %8, %9 : vector<1x16xf32>
    %11 = math.exp %10 : vector<1x16xf32>
    %cst_9 = arith.constant 1.000000e+00 : f32
    %12 = vector.broadcast %cst_9 : f32 to vector<1x16xf32>
    %13 = arith.addf %12, %11 : vector<1x16xf32>
    %14 = arith.mulf %13, %13 : vector<1x16xf32>
    %cst_10 = arith.constant 1.000000e+00 : f32
    %15 = vector.broadcast %cst_10 : f32 to vector<1x16xf32>
    %16 = arith.subf %14, %15 : vector<1x16xf32>
    %17 = arith.mulf %8, %16 : vector<1x16xf32>
    %cst_11 = arith.constant 1.000000e+00 : f32
    %18 = vector.broadcast %cst_11 : f32 to vector<1x16xf32>
    %19 = arith.addf %14, %18 : vector<1x16xf32>
    %20 = tpu.reciprocal %19 {approx = true} : vector<1x16xf32> -> vector<1x16xf32>
    %21 = arith.mulf %17, %20 : vector<1x16xf32>
    %c0_12 = arith.constant 0 : index
    %c0_13 = arith.constant 0 : index
    %22 = vector.load %arg5[%c0_12, %c0_13] : memref<1x16xf32, #tpu.memory_space<vmem>>, vector<1x16xf32>
    tpu.vector_store %arg5[%c0_12, %c0_13], %21 {strides = array<i32>} : memref<1x16xf32, #tpu.memory_space<vmem>>, vector<1x16xf32>,
    return
  }
  func.func @transform_0(%arg0: i32) -> (i32, i32) {
    %c0_i32 = arith.constant 0 : i32
    %c0_i32_0 = arith.constant 0 : i32
    return %c0_i32, %arg0 : i32, i32
  }
  func.func @transform_1(%arg0: i32) -> (i32, i32) {
    %c0_i32 = arith.constant 0 : i32
    %c0_i32_0 = arith.constant 0 : i32
    %c0_i32_1 = arith.constant 0 : i32
    return %c0_i32, %c0_i32_0 : i32, i32
  }
  func.func @transform_2(%arg0: i32) -> (i32, i32) {
    %c0_i32 = arith.constant 0 : i32
    %c0_i32_0 = arith.constant 0 : i32
    %c0_i32_1 = arith.constant 0 : i32
    return %c0_i32, %c0_i32_0 : i32, i32
  }
  func.func @transform_3(%arg0: i32) -> (i32, i32) {
    %c0_i32 = arith.constant 0 : i32
    %c0_i32_0 = arith.constant 0 : i32
    %c0_i32_1 = arith.constant 0 : i32
    return %c0_i32, %c0_i32_0 : i32, i32
  }
  func.func @transform_4(%arg0: i32) -> (i32, i32) {
    %c0_i32 = arith.constant 0 : i32
    %c0_i32_0 = arith.constant 0 : i32
    return %c0_i32, %arg0 : i32, i32
  }
}

</mosaic_0001>

<bundles_post_ra>
// kernel: tpu_custom_call.1
= control target key start
LH: loop header
LB: loop body
LE: loop exit
PB: predicated region body
PF: predicated region fallthrough
CT: control target
= control target key end

     0   :  { %10 = vsyncpa [#allocation4], 0  ;;  %s274_s0 = inlined_call_operand.hbm [shape: bf16[16,16], index: 0, kind: input, shape index: {}]   ;;  %s275_s1 = inlined_call_operand.hbm [shape: f32[8,16], index: 1, kind: input, shape index: {}]   ;;  %s276_s2 = inlined_call_operand.vmem [shape: f32[1,8], index: 2, kind: input, shape index: {}]   ;;  %s277_s3 = inlined_call_operand.<no memory space> [shape: f32[1,1], index: 3, kind: input, shape index: {}]   ;;  %s278_s4 = inlined_call_operand.hbm [shape: f32[1,16], index: 4, kind: output, shape index: {}]  }
   0x1   :  { %11 = vsyncpa [#allocation7], 0 }
   0x2   :  { %12 = vsyncpa [#allocation5], 0  ;;  %s17_s17 = sshll.u32 %s274_s0, 4  ;;  %s229_s18 = smov [#allocation3]   ;;  %s18_s17 = int_to_ptr.hbm [resolvable:$true] %s17_s17 }
   0x3   :  { %s19_s19 = sshll.u32 %s229_s18, 4  ;;  %s31_s22 = sshll.u32 %s275_s1, 4  ;;  %s20_s19 = int_to_ptr.vmem [resolvable:$true] %s19_s19  ;;  %s32_s22 = int_to_ptr.hbm [resolvable:$true] %s31_s22 }
   0x4   :  { %s230_s23 = smov 64   ;;  %s231_s24 = smov 4  }
   0x5   :  { %25 = dma.hbm_to_vmem [thread:$0]  %s18_s17, 128, %s20_s19, [#allocation4], %s230_s23, %s230_s23, %s231_s24  }
   0x6   :  { %s232_s25 = smov [#allocation6]  }
   0x7   :  { %s33_s26 = sshll.u32 %s232_s25, 4  ;;  %s34_s26 = int_to_ptr.vmem [resolvable:$true] %s33_s26 }
   0x8   :  { %36 = dma.hbm_to_vmem [thread:$0]  %s32_s22, 128, %s34_s26, [#allocation7]  }
   0x9   :  { %223 = dma.done.wait [#allocation4], 128  }
   0xa   :  { %224 = vsyncadd [#allocation4], 4294967168 }
   0xb   :  { %225 = dma.done.wait [#allocation7], 128  }
   0xc   :  { %226 = vsyncadd [#allocation7], 4294967168  ;;  %vm52_vm0 = vcmask 64512   ;;  %v51_v0 = vld [vmem:[#allocation6] sm:$0xff]  ;;  %v50_v1 = vld [vmem:[%s276_s2] sm:$0x1]  ;;  %v80_v5 = vstv %s277_s3 }
   0xd   :  { %71 = vmatpush.msra.mxu0 %v51_v0  ;;  %v141_v2 = vld [vmem:[#allocation3] sm:$0xff]  ;;  %vm87_vm1 = vcmask 130048   ;;  %s233_s2 = smov [#allocation8]   ;;  %s123_s6 = sshll.u32 %s278_s4, 4  ;;  %vm114_vm2 = vcmask 122880   ;;  %s124_s6 = int_to_ptr.hbm [resolvable:$true] %s123_s6 }
   0xe   :  { %134 = vmatmul.msk.f32.vlgmr.msra.gmra.mxu0 %vm52_vm0, %v50_v1  ;;  %98 = vmatpush.bf16.msra.mxu1 %v141_v2  ;;  %s121_s29 = sshll.u32 %s233_s2, 4  ;;  %s122_s29 = int_to_ptr.vmem [resolvable:$true] %s121_s29 }
  0x8b   :  { %v73_v3 = vpop.f32.mrf.mxu0 }
  0x8c   :  { %v76_v4 = vpack.c.bf16 %v73_v3, %v73_v3 }
  0x8e   :  { %139 = vmatmul.msk.bf16.vlgmr.msra.gmra.mxu1 %vm87_vm1, %v76_v4 }
 0x10b   :  { %v100_v6 = vpop.f32.mrf.mxu1 }
 0x10c   :  { %v101_v7 = vadd.f32 %v100_v6, %v80_v5 }
 0x10e   :  { %v104_v8 = vmin.f32 %v101_v7, 20.0 }
 0x110   :  { %v105_v9 = vmul.f32 1.442695, %v104_v8 }
 0x112   :  { %147 = vpow2.f32 %v105_v9 }
 0x113   :  { %v102_v10 = vpop.f32.mrf.mxu1 }
 0x118   :  { %v148_v11 = vpop.eup %147 }
 0x119   :  { %v107_v12 = vadd.f32 1.0, %v148_v11 }
 0x11b   :  { %v108_v13 = vmul.f32 %v107_v12, %v107_v12 }
 0x11d   :  { %v111_v14 = vadd.f32 1.0, %v108_v13  ;;  %v140_v15 = vadd.f32 -1.0, %v108_v13 }
 0x11f   :  { %149 = vrcp.f32 %v111_v14  ;;  %v110_v16 = vmul.f32 %v140_v15, %v101_v7 }
 0x125   :  { %v150_v17 = vpop.eup %149 }
 0x126   :  { %v113_v18 = vmul.f32 %v150_v17, %v110_v16 }
 0x128   :  { %115 = vst.msk [vmem:[#allocation8] sm:$0x1] %vm114_vm2, %v113_v18 }
 0x129   :  { %126 = dma.vmem_to_hbm [thread:$0]  %s122_s29, 16, %s124_s6, [#allocation5]  }
 0x12a   :  { %227 = dma.done.wait [#allocation5], 16  }
 0x12b   :  { %228 = vsyncadd [#allocation5], 4294967280 }
 0x12c   :  { %131 = vsyncpa [#allocation4], 1 }
 0x12d   :  { %132 = vsyncpa [#allocation7], 1 }
 0x12e   :  { %133 = vsyncpa [#allocation5], 1 }

</bundles_post_ra>
